<compile_context>
chip_gen: v6e
topology: v6e:2x2x1
jax: 0.10.0
libtpu: 0.0.40
codegen_flags: <defaults>
</compile_context>

<pallas_src>
import jax
import jax.numpy as jnp
from jax.experimental import pallas as pl
from jax.experimental.pallas import tpu as pltpu

_LANES = 128


def _tanh_kernel(x_ref, o_ref):
    # jnp.tanh lowers to the EUP tanh op on TPU (its own VLIW slot), so the
    # kernel stays DMA/HBM-bound rather than VALU-bound.
    # TODO(synk): if a bundle dump ever shows a VALU polynomial expansion,
    # reformulate as 1 - 2 * pl.reciprocal(jnp.exp(2*x) + 1, approx=True).
    o_ref[...] = jnp.tanh(x_ref[...])


def _round_up(a: int, b: int) -> int:
    return ((a + b - 1) // b) * b


def _default_block_bytes() -> int:
    """Chip-aware streaming block size (bytes per input tile)."""
    try:
        kind = jax.devices()[0].device_kind.lower()
    except Exception:
        kind = ""
    if "v5" in kind:
        return 2 * 1024 * 1024   # v5e: 16 MiB scoped VMEM default -> stay small
    if "v6" in kind:
        return 4 * 1024 * 1024   # v6e: amortize per-step overhead further
    if "7" in kind:
        return 6 * 1024 * 1024   # v7x: 3.2 TB/s HBM -> bigger blocks pay off
    return 2 * 1024 * 1024


def _tanh_2d(x2d: jax.Array, tile_rows: int, itemsize: int) -> jax.Array:
    """Run the streaming tanh kernel over a lane-dense [rows, 128] slab."""
    rows, lanes = x2d.shape
    grid = (pl.cdiv(rows, tile_rows),)
    n_elems = rows * lanes
    tile_bytes = tile_rows * lanes * itemsize
    # in + out double-buffered = 4 tiles, plus headroom for internal scratch.
    vmem_limit = min(64 * 1024 * 1024,
                     max(16 * 1024 * 1024, 4 * tile_bytes + 4 * 1024 * 1024))

    return pl.pallas_call(
        _tanh_kernel,
        out_shape=jax.ShapeDtypeStruct((rows, lanes), x2d.dtype),
        grid_spec=pltpu.PrefetchScalarGridSpec(
            num_scalar_prefetch=0,
            grid=grid,
            in_specs=[pl.BlockSpec((tile_rows, lanes), lambda i: (i, 0))],
            out_specs=pl.BlockSpec((tile_rows, lanes), lambda i: (i, 0)),
        ),
        compiler_params=pltpu.CompilerParams(
            dimension_semantics=("parallel",),
            vmem_limit_bytes=vmem_limit,
        ),
        cost_estimate=pl.CostEstimate(
            flops=0,
            transcendentals=n_elems,
            bytes_accessed=2 * n_elems * itemsize,
        ),
    )(x2d)


def tanh_forward(x: jax.Array, *, block_bytes: int | None = None,
                 min_pallas_bytes: int = 128 * 1024) -> jax.Array:
    """Elementwise tanh via a Pallas TPU kernel (forward pass of TanH)."""
    orig_shape = x.shape
    dtype = x.dtype
    itemsize = jnp.dtype(dtype).itemsize
    n = x.size

    # Tiny activations: launch/pipeline overhead dominates; let XLA fuse it.
    if n == 0 or n * itemsize < min_pallas_bytes or n < _LANES:
        return jnp.tanh(x)

    if block_bytes is None:
        block_bytes = _default_block_bytes()

    # dtype-aware sublane packing: 8 rows (f32), 16 (bf16/f16), 32 (int8/fp8).
    sublane_align = max(8, 32 // itemsize)

    flat = x.reshape(-1)
    n_main = (n // _LANES) * _LANES        # lane-aligned prefix
    rows = n_main // _LANES

    # Max rows per block from the byte budget, aligned to the sublane packing.
    max_tile_rows = max(
        sublane_align,
        (block_bytes // (_LANES * itemsize)) // sublane_align * sublane_align,
    )

    # Number of grid steps: >=2 (and even when >1) once the slab is >~1 MiB so
    # the memory-bound pass can shard across both TensorCores on v7x.
    num_blocks = pl.cdiv(rows, max_tile_rows)
    if rows * _LANES * itemsize > (1 << 20):
        num_blocks = max(num_blocks, 2)
    if num_blocks > 1 and num_blocks % 2 == 1:
        num_blocks += 1

    if num_blocks == 1:
        # Single block covering the full array extent (always a legal shape).
        tile_rows = rows
    else:
        tile_rows = max(sublane_align,
                        _round_up(pl.cdiv(rows, num_blocks), sublane_align))

    x2d = flat[:n_main].reshape(rows, _LANES)
    out_main = _tanh_2d(x2d, tile_rows, itemsize).reshape(-1)

    if n_main == n:
        return out_main.reshape(orig_shape)

    # <=127-element tail: plain jnp.tanh (avoids a full-tensor pad+slice pass).
    out_tail = jnp.tanh(flat[n_main:])
    return jnp.concatenate([out_main, out_tail]).reshape(orig_shape)


if __name__ == "__main__":
    key = jax.random.PRNGKey(0)
    k1, k2 = jax.random.split(key)

    # NCHW input, consistent with typical PyTorch conv activation layouts.
    x = jax.random.normal(k1, (2, 4, 16, 16), dtype=jnp.float32)
    ref = jnp.tanh(x)

    # Default path (small tensor -> fused jnp.tanh fallback).
    out_default = jax.block_until_ready(tanh_forward(x))
    assert out_default.shape == x.shape and out_default.dtype == x.dtype
    assert jnp.allclose(out_default, ref, atol=1e-6, rtol=1e-6)

    # Force the Pallas kernel path on the same input to exercise/verify it.
    out_pallas = jax.block_until_ready(tanh_forward(x, min_pallas_bytes=0))
    assert out_pallas.shape == x.shape and out_pallas.dtype == x.dtype
    assert jnp.allclose(out_pallas, ref, atol=1e-6, rtol=1e-6)

    # Unaligned (n % 128 != 0) path: aligned prefix via the kernel + tiny tail.
    x_odd = jax.random.normal(k2, (5, 7, 9), dtype=jnp.float32)
    out_odd = jax.block_until_ready(tanh_forward(x_odd, min_pallas_bytes=0))
    assert out_odd.shape == x_odd.shape and out_odd.dtype == x_odd.dtype
    assert jnp.allclose(out_odd, jnp.tanh(x_odd), atol=1e-6, rtol=1e-6)

    print("KERNEL_OK")
</pallas_src>

<mosaic_0001>
module attributes {stable_mosaic.version = 11 : i64} {
  func.func @_tanh_kernel(%arg0: i32, %arg1: memref<16x128xf32, #tpu.memory_space<vmem>>, %arg2: memref<16x128xf32, #tpu.memory_space<vmem>>) attributes {dimension_semantics = [#tpu.dimension_semantics<parallel>], iteration_bounds = array<i64: 1>, scalar_prefetch = 0 : i64, scratch_operands = 0 : i64, tpu.core_type = #tpu.core_type<tc>, window_params = [{transform_indices = @transform_0, window_bounds = array<i64: 16, 128>}, {transform_indices = @transform_1, window_bounds = array<i64: 16, 128>}]} {
    %c0 = arith.constant 0 : index
    %c0_0 = arith.constant 0 : index
    %0 = vector.load %arg1[%c0, %c0_0] : memref<16x128xf32, #tpu.memory_space<vmem>>, vector<16x128xf32>
    %1 = math.tanh %0 : vector<16x128xf32>
    %c0_1 = arith.constant 0 : index
    %c0_2 = arith.constant 0 : index
    %2 = vector.load %arg2[%c0_1, %c0_2] : memref<16x128xf32, #tpu.memory_space<vmem>>, vector<16x128xf32>
    tpu.vector_store %arg2[%c0_1, %c0_2], %1 {strides = array<i32>} : memref<16x128xf32, #tpu.memory_space<vmem>>, vector<16x128xf32>,
    return
  }
  func.func @transform_0(%arg0: i32) -> (i32, i32) {
    %c0_i32 = arith.constant 0 : i32
    %c0_i32_0 = arith.constant 0 : i32
    return %arg0, %c0_i32 : i32, i32
  }
  func.func @transform_1(%arg0: i32) -> (i32, i32) {
    %c0_i32 = arith.constant 0 : i32
    %c0_i32_0 = arith.constant 0 : i32
    return %arg0, %c0_i32 : i32, i32
  }
}

</mosaic_0001>

<bundles_post_ra>
// kernel: tpu_custom_call.1
= control target key start
LH: loop header
LB: loop body
LE: loop exit
PB: predicated region body
PF: predicated region fallthrough
CT: control target
= control target key end

     0   :  { %6 = vsyncpa [#allocation3], 0  ;;  %s118_s0 = inlined_call_operand.hbm [shape: f32[16,128], index: 0, kind: input, shape index: {}]   ;;  %s119_s1 = inlined_call_operand.hbm [shape: f32[16,128], index: 1, kind: output, shape index: {}]  }
   0x1   :  { %7 = vsyncpa [#allocation4], 0  ;;  %s98_s6 = smov [#allocation2]  }
   0x2   :  { %s13_s7 = sshll.u32 %s98_s6, 4  ;;  %s14_s7 = int_to_ptr.vmem [resolvable:$true] %s13_s7 }
   0x3   :  { %s62_s8 = scalar_lea.vmem %s14_s7, 256  ;;  %p67_p1 = scmp.lt.s32.totalorder %s14_s7, %s14_s7 }
   0x4   :  { %p63_p0 = scmp.ne.s32.totalorder %s14_s7, %s62_s8  ;;  %p68_p2 = scmp.lt.s32.totalorder %s62_s8, %s62_s8 }
   0x6   :  { %p69_p3 = por %p68_p2, %p67_p1 }
   0x8   :  { %p70_p4 = pnand %p69_p3, %p63_p0 }
   0xa   :  { %73 = shalt.err (!%p70_p4)
}
   0xb   :  { %s99_s9 = smov 128   ;;  %s100_s10 = smov 8  }
   0xc   :  { %19 = dma.hbm_to_vmem [thread:$0]  %s118_s0, 256, %s14_s7, [#allocation3], %s99_s9, %s99_s9, %s100_s10  }
   0xd   :  { %94 = dma.done.wait [#allocation3], 256  }
   0xe   :  { %95 = vsyncadd [#allocation3], 4294967040  ;;  %v23_v0 = vld [vmem:[#allocation2] sm:$0xff]  ;;  %v24_v1 = vld [vmem:[#allocation2 + $0x8] sm:$0xff]  ;;  %s101_s13 = smov [#allocation5]  }
   0xf   :  { %50 = vtanh.f32 %v23_v0  ;;  %s34_s14 = sshll.u32 %s101_s13, 4  ;;  %s35_s14 = int_to_ptr.vmem [resolvable:$true] %s34_s14 }
  0x10   :  { %52 = vtanh.f32 %v24_v1  ;;  %s74_s15 = scalar_lea.vmem %s35_s14, 256  ;;  %p79_p6 = scmp.lt.s32.totalorder %s35_s14, %s35_s14 }
  0x11   :  { %p75_p5 = scmp.ne.s32.totalorder %s35_s14, %s74_s15  ;;  %p80_p7 = scmp.lt.s32.totalorder %s74_s15, %s74_s15 }
  0x13   :  { %p81_p8 = por %p80_p7, %p79_p6 }
  0x15   :  { %p82_p9 = pnand %p81_p8, %p75_p5 }
  0x1c   :  { %v51_v2 = vpop.eup %50 }
  0x1d   :  { %v53_v3 = vpop.eup %52  ;;  %27 = vst [vmem:[#allocation5] sm:$0xff] %v51_v2 }
  0x1e   :  { %28 = vst [vmem:[#allocation5 + $0x8] sm:$0xff] %v53_v3 }
  0x1f   :  { %85 = shalt.err (!%p82_p9)
}
  0x20   :  { %40 = dma.vmem_to_hbm [thread:$0]  %s35_s14, 256, %s119_s1, [#allocation4], %s99_s9, %s99_s9, %s100_s10  }
  0x21   :  { %96 = dma.done.wait [#allocation4], 256  }
  0x22   :  { %97 = vsyncadd [#allocation4], 4294967040 }
  0x23   :  { %44 = vsyncpa [#allocation3], 1 }
  0x24   :  { %45 = vsyncpa [#allocation4], 1 }

</bundles_post_ra>
